<compile_context>
chip_gen: v7x
topology: tpu7x:2x2x1
jax: 0.10.0
libtpu: 0.0.40
codegen_flags: <defaults>
</compile_context>

<pallas_src>
import functools

import jax
import jax.numpy as jnp
import numpy as np
from jax.experimental import pallas as pl
from jax.experimental.pallas import tpu as pltpu

LANE = 128  # output-head lane padding


def vae_forward_kernel(sa_ref, state_ref, eps_ref,
                       ew1_ref, eb1_ref,
                       ew2_ref, eb2_ref,
                       ew3_ref, eb3_ref,
                       dw1s_ref, dw1z_ref, db1_ref,
                       dw2_ref, db2_ref,
                       dw3_ref, db3_ref,
                       out_ref,
                       *, max_action, lane):
    f32 = jnp.float32
    bf16 = jnp.bfloat16

    sa = sa_ref[...].astype(bf16)          # concat(state, action), done in wrapper
    state = state_ref[...].astype(bf16)
    eps = eps_ref[...]                     # (tile_b, lane) f32, zero-padded

    # ---------------- encoder: Linear-ReLU, Linear-ReLU, Linear --------------
    h = jnp.dot(sa, ew1_ref[...], preferred_element_type=f32) + eb1_ref[...]
    h = jnp.maximum(h, 0.0).astype(bf16)
    h = jnp.dot(h, ew2_ref[...], preferred_element_type=f32) + eb2_ref[...]
    h = jnp.maximum(h, 0.0).astype(bf16)

    # Third layer: one 2*lane-wide dot, split at a vreg-aligned lane offset.
    enc = jnp.dot(h, ew3_ref[...], preferred_element_type=f32) + eb3_ref[...]
    mu = enc[:, :lane]
    logstd = jnp.clip(enc[:, lane:], -4.0, 15.0)
    std = jnp.exp(logstd)

    # Normal(mu, std).rsample() -> mu + std * eps (eps ~ N(0,1), padded lanes 0)
    z = mu + std * eps

    # ---------------- decoder: Linear-ReLU, Linear-ReLU, Linear --------------
    h = (jnp.dot(state, dw1s_ref[...], preferred_element_type=f32)
         + jnp.dot(z.astype(bf16), dw1z_ref[...], preferred_element_type=f32)
         + db1_ref[...])
    h = jnp.maximum(h, 0.0).astype(bf16)
    h = jnp.dot(h, dw2_ref[...], preferred_element_type=f32) + db2_ref[...]
    h = jnp.maximum(h, 0.0).astype(bf16)
    dec = jnp.dot(h, dw3_ref[...], preferred_element_type=f32) + db3_ref[...]
    act = max_action * jnp.tanh(dec)

    # Three lane-dense, 128-aligned unmasked stores: [ mu | std | act ].
    out_ref[:, 0:lane] = mu
    out_ref[:, lane:2 * lane] = std
    out_ref[:, 2 * lane:3 * lane] = act


def _pad_cols(x, n):
    return jnp.pad(x, ((0, 0), (0, n - x.shape[1])))


def _pad_rows(x, n):
    return jnp.pad(x, ((0, n - x.shape[0]), (0, 0)))


def vae_forward(state, action, eps, params, *, max_action, latent_dim, tile_b=None):
    """Whole VAE forward pass in one Pallas kernel, gridded over the batch."""
    batch, state_dim = state.shape
    _, action_dim = action.shape
    feat = params["ew2"].shape[0]
    bf16 = jnp.bfloat16
    lane = LANE
    out_width = 3 * lane

    # ---- wrapper-side prep (runs once per call under XLA, off the kernel path)
    sa = jnp.concatenate([state, action], axis=-1)          # (B, S+A)
    eps_p = _pad_cols(eps, lane)                             # (B, 128), zero-padded

    # Encoder head: [mu cols padded to 128 | logstd cols padded to 128] -> one dot.
    ew3m = _pad_cols(params["ew3"][:, :latent_dim], lane)
    ew3l = _pad_cols(params["ew3"][:, latent_dim:], lane)
    ew3p = jnp.concatenate([ew3m, ew3l], axis=1).astype(bf16)      # (feat, 256)
    eb3m = _pad_cols(params["eb3"][:, :latent_dim], lane)
    eb3l = _pad_cols(params["eb3"][:, latent_dim:], lane)
    eb3p = jnp.concatenate([eb3m, eb3l], axis=1)                    # (1, 256) f32

    # Decoder first layer split: state rows / z rows (z rows zero-padded to 128).
    dw1s = params["dw1"][:state_dim].astype(bf16)                   # (S, feat)
    dw1z = _pad_rows(params["dw1"][state_dim:], lane).astype(bf16)  # (128, feat)

    # Decoder head padded to 128 output lanes.
    dw3p = _pad_cols(params["dw3"], lane).astype(bf16)              # (feat, 128)
    db3p = _pad_cols(params["db3"], lane)                           # (1, 128) f32

    weights = (params["ew1"].astype(bf16), params["eb1"],
               params["ew2"].astype(bf16), params["eb2"],
               ew3p, eb3p,
               dw1s, dw1z, params["db1"],
               params["dw2"].astype(bf16), params["db2"],
               dw3p, db3p)

    # Batch tile: >= 2 grid steps when possible (v7x megacore split), tile is a
    # multiple of 8 and capped at 1024 rows (big tiles amortize per-step cost).
    if tile_b is None:
        half = pl.cdiv(batch, 2)
        tile_b = max(8, min(1024, ((half + 7) // 8) * 8))
        tile_b = min(tile_b, max(8, ((batch + 7) // 8) * 8))
    grid = (pl.cdiv(batch, tile_b),)

    def batch_spec(f):
        return pl.BlockSpec((tile_b, f), lambda i: (i, 0))

    def resident_spec(arr):
        # Full array as one block, constant index map -> stays VMEM-resident.
        return pl.BlockSpec(arr.shape, lambda i: (0, 0))

    in_specs = ([batch_spec(state_dim + action_dim),
                 batch_spec(state_dim),
                 batch_spec(lane)]
                + [resident_spec(w) for w in weights])
    out_specs = pl.BlockSpec((tile_b, out_width), lambda i: (i, 0))

    flops = 2 * batch * ((state_dim + action_dim) * feat + feat * feat
                         + feat * 2 * lane
                         + (state_dim + lane) * feat + feat * feat
                         + feat * lane)
    transcendentals = batch * 2 * lane                 # exp + tanh on padded lanes
    weight_bytes = sum(int(w.size) * w.dtype.itemsize for w in weights)
    bytes_accessed = (4 * (sa.size + state.size + eps_p.size + batch * out_width)
                      + weight_bytes)

    kernel = functools.partial(vae_forward_kernel, max_action=max_action, lane=lane)

    packed = pl.pallas_call(
        kernel,
        out_shape=jax.ShapeDtypeStruct((batch, out_width), jnp.float32),
        grid=grid,
        in_specs=in_specs,
        out_specs=out_specs,
        compiler_params=pltpu.CompilerParams(
            dimension_semantics=("parallel",),
            vmem_limit_bytes=48 * 1024 * 1024),
        cost_estimate=pl.CostEstimate(flops=flops,
                                      transcendentals=transcendentals,
                                      bytes_accessed=bytes_accessed),
    )(sa, state, eps_p, *weights)

    mu = packed[:, :latent_dim]
    std = packed[:, lane:lane + latent_dim]
    act = packed[:, 2 * lane:2 * lane + action_dim]
    return mu, std, act


def init_linear(key, in_features, out_features):
    """Deterministic torch.nn.Linear-style init: U(-1/sqrt(in), 1/sqrt(in))."""
    kw, kb = jax.random.split(key)
    bound = 1.0 / np.sqrt(in_features)
    w = jax.random.uniform(kw, (in_features, out_features), jnp.float32, -bound, bound)
    b = jax.random.uniform(kb, (1, out_features), jnp.float32, -bound, bound)
    return w, b


def make_params(key, state_dim, action_dim, vae_features):
    latent_dim = 2 * action_dim
    enc_in = state_dim + action_dim
    enc_out = 2 * latent_dim
    dec_in = state_dim + latent_dim
    dec_out = action_dim

    keys = jax.random.split(key, 6)
    p = {}
    # encoder: Linear(enc_in, h) - ReLU - Linear(h, h) - ReLU - Linear(h, enc_out)
    p["ew1"], p["eb1"] = init_linear(keys[0], enc_in, vae_features)
    p["ew2"], p["eb2"] = init_linear(keys[1], vae_features, vae_features)
    p["ew3"], p["eb3"] = init_linear(keys[2], vae_features, enc_out)
    # decoder: Linear(dec_in, h) - ReLU - Linear(h, h) - ReLU - Linear(h, dec_out)
    p["dw1"], p["db1"] = init_linear(keys[3], dec_in, vae_features)
    p["dw2"], p["db2"] = init_linear(keys[4], vae_features, vae_features)
    p["dw3"], p["db3"] = init_linear(keys[5], vae_features, dec_out)
    return p, latent_dim


def reference_forward(state, action, eps, params, *, max_action, latent_dim,
                      matmul_dtype=jnp.float32):
    """Pure-JAX reference. matmul_dtype=bfloat16 mirrors the kernel's MXU dtype."""
    def dot(a, w):
        return jnp.dot(a.astype(matmul_dtype), w.astype(matmul_dtype),
                       preferred_element_type=jnp.float32)

    sa = jnp.concatenate([state, action], axis=-1)
    h = jnp.maximum(dot(sa, params["ew1"]) + params["eb1"], 0.0)
    h = jnp.maximum(dot(h, params["ew2"]) + params["eb2"], 0.0)
    enc = dot(h, params["ew3"]) + params["eb3"]
    mu, logstd = enc[:, :latent_dim], enc[:, latent_dim:]
    std = jnp.exp(jnp.clip(logstd, -4.0, 15.0))
    z = mu + std * eps
    sz = jnp.concatenate([state, z], axis=-1)
    h = jnp.maximum(dot(sz, params["dw1"]) + params["db1"], 0.0)
    h = jnp.maximum(dot(h, params["dw2"]) + params["db2"], 0.0)
    act = max_action * jnp.tanh(dot(h, params["dw3"]) + params["db3"])
    return mu, std, act


if __name__ == "__main__":
    # Small, module-consistent shapes.
    batch = 8
    state_dim = 16
    action_dim = 4
    vae_features = 32
    vae_layers = 2  # MLP structure hardcoded to 2 hidden layers above
    max_action = 1.0

    root = jax.random.PRNGKey(0)
    k_params, k_state, k_action, k_eps = jax.random.split(root, 4)

    params, latent_dim = make_params(k_params, state_dim, action_dim, vae_features)

    state = jax.random.normal(k_state, (batch, state_dim), jnp.float32)
    action = jax.random.normal(k_action, (batch, action_dim), jnp.float32)
    # reparameterization noise for Normal(mu, std).rsample()
    eps = jax.random.normal(k_eps, (batch, latent_dim), jnp.float32)

    mu, std, act = vae_forward(state, action, eps, params,
                               max_action=max_action, latent_dim=latent_dim)
    jax.block_until_ready((mu, std, act))

    # Exact-math check vs. a reference using the same bf16 MXU operands.
    mu_r, std_r, act_r = reference_forward(state, action, eps, params,
                                           max_action=max_action,
                                           latent_dim=latent_dim,
                                           matmul_dtype=jnp.bfloat16)
    np.testing.assert_allclose(np.asarray(mu), np.asarray(mu_r), rtol=1e-4, atol=1e-4)
    np.testing.assert_allclose(np.asarray(std), np.asarray(std_r), rtol=1e-4, atol=1e-4)
    np.testing.assert_allclose(np.asarray(act), np.asarray(act_r), rtol=1e-4, atol=1e-4)

    # Loose semantic sanity check vs. the full-f32 reference.
    mu_f, std_f, act_f = reference_forward(state, action, eps, params,
                                           max_action=max_action,
                                           latent_dim=latent_dim,
                                           matmul_dtype=jnp.float32)
    np.testing.assert_allclose(np.asarray(mu), np.asarray(mu_f), rtol=0.1, atol=0.1)
    np.testing.assert_allclose(np.asarray(std), np.asarray(std_f), rtol=0.1, atol=0.1)
    np.testing.assert_allclose(np.asarray(act), np.asarray(act_f), rtol=0.1, atol=0.1)

    print("KERNEL_OK")
</pallas_src>

<mosaic_0001>
module attributes {stable_mosaic.version = 11 : i64} {
  func.func @vae_forward_kernel(%arg0: i32, %arg1: memref<8x20xf32, #tpu.memory_space<vmem>>, %arg2: memref<8x16xf32, #tpu.memory_space<vmem>>, %arg3: memref<8x128xf32, #tpu.memory_space<vmem>>, %arg4: memref<20x32xbf16, #tpu.memory_space<vmem>>, %arg5: memref<1x32xf32, #tpu.memory_space<vmem>>, %arg6: memref<32x32xbf16, #tpu.memory_space<vmem>>, %arg7: memref<1x32xf32, #tpu.memory_space<vmem>>, %arg8: memref<32x256xbf16, #tpu.memory_space<vmem>>, %arg9: memref<1x256xf32, #tpu.memory_space<vmem>>, %arg10: memref<16x32xbf16, #tpu.memory_space<vmem>>, %arg11: memref<128x32xbf16, #tpu.memory_space<vmem>>, %arg12: memref<1x32xf32, #tpu.memory_space<vmem>>, %arg13: memref<32x32xbf16, #tpu.memory_space<vmem>>, %arg14: memref<1x32xf32, #tpu.memory_space<vmem>>, %arg15: memref<32x128xbf16, #tpu.memory_space<vmem>>, %arg16: memref<1x128xf32, #tpu.memory_space<vmem>>, %arg17: memref<8x384xf32, #tpu.memory_space<vmem>>) attributes {dimension_semantics = [#tpu.dimension_semantics<parallel>], iteration_bounds = array<i64: 1>, scalar_prefetch = 0 : i64, scratch_operands = 0 : i64, tpu.core_type = #tpu.core_type<tc>, window_params = [{transform_indices = @transform_0, window_bounds = array<i64: 8, 20>}, {transform_indices = @transform_1, window_bounds = array<i64: 8, 16>}, {transform_indices = @transform_2, window_bounds = array<i64: 8, 128>}, {pipeline_mode = #tpu.pipeline_mode<synchronous>, transform_indices = @transform_3, window_bounds = array<i64: 20, 32>}, {pipeline_mode = #tpu.pipeline_mode<synchronous>, transform_indices = @transform_4, window_bounds = array<i64: 1, 32>}, {pipeline_mode = #tpu.pipeline_mode<synchronous>, transform_indices = @transform_5, window_bounds = array<i64: 32, 32>}, {pipeline_mode = #tpu.pipeline_mode<synchronous>, transform_indices = @transform_6, window_bounds = array<i64: 1, 32>}, {pipeline_mode = #tpu.pipeline_mode<synchronous>, transform_indices = @transform_7, window_bounds = array<i64: 32, 256>}, {pipeline_mode = #tpu.pipeline_mode<synchronous>, transform_indices = @transform_8, window_bounds = array<i64: 1, 256>}, {pipeline_mode = #tpu.pipeline_mode<synchronous>, transform_indices = @transform_9, window_bounds = array<i64: 16, 32>}, {pipeline_mode = #tpu.pipeline_mode<synchronous>, transform_indices = @transform_10, window_bounds = array<i64: 128, 32>}, {pipeline_mode = #tpu.pipeline_mode<synchronous>, transform_indices = @transform_11, window_bounds = array<i64: 1, 32>}, {pipeline_mode = #tpu.pipeline_mode<synchronous>, transform_indices = @transform_12, window_bounds = array<i64: 32, 32>}, {pipeline_mode = #tpu.pipeline_mode<synchronous>, transform_indices = @transform_13, window_bounds = array<i64: 1, 32>}, {pipeline_mode = #tpu.pipeline_mode<synchronous>, transform_indices = @transform_14, window_bounds = array<i64: 32, 128>}, {pipeline_mode = #tpu.pipeline_mode<synchronous>, transform_indices = @transform_15, window_bounds = array<i64: 1, 128>}, {transform_indices = @transform_16, window_bounds = array<i64: 8, 384>}]} {
    %c0 = arith.constant 0 : index
    %c0_0 = arith.constant 0 : index
    %0 = vector.load %arg1[%c0, %c0_0] : memref<8x20xf32, #tpu.memory_space<vmem>>, vector<8x20xf32>
    %1 = arith.truncf %0 : vector<8x20xf32> to vector<8x20xbf16>
    %c0_1 = arith.constant 0 : index
    %c0_2 = arith.constant 0 : index
    %2 = vector.load %arg2[%c0_1, %c0_2] : memref<8x16xf32, #tpu.memory_space<vmem>>, vector<8x16xf32>
    %3 = arith.truncf %2 : vector<8x16xf32> to vector<8x16xbf16>
    %c0_3 = arith.constant 0 : index
    %c0_4 = arith.constant 0 : index
    %4 = vector.load %arg3[%c0_3, %c0_4] : memref<8x128xf32, #tpu.memory_space<vmem>>, vector<8x128xf32>
    %c0_5 = arith.constant 0 : index
    %c0_6 = arith.constant 0 : index
    %5 = vector.load %arg4[%c0_5, %c0_6] : memref<20x32xbf16, #tpu.memory_space<vmem>>, vector<20x32xbf16>
    %cst = arith.constant dense<0.000000e+00> : vector<8x32xf32>
    %6 = tpu.matmul %1, %5, %cst {dimension_numbers = #tpu.dot_dimension_numbers<[1], [0], [0], [1], [0, 0, 1, 1], [], []>} : vector<8x20xbf16>, vector<20x32xbf16>, vector<8x32xf32> -> vector<8x32xf32>
    %c0_7 = arith.constant 0 : index
    %c0_8 = arith.constant 0 : index
    %7 = vector.load %arg5[%c0_7, %c0_8] : memref<1x32xf32, #tpu.memory_space<vmem>>, vector<1x32xf32>
    %8 = vector.broadcast %7 : vector<1x32xf32> to vector<8x32xf32>
    %9 = arith.addf %6, %8 : vector<8x32xf32>
    %cst_9 = arith.constant 0.000000e+00 : f32
    %10 = vector.broadcast %cst_9 : f32 to vector<8x32xf32>
    %11 = arith.maximumf %9, %10 : vector<8x32xf32>
    %12 = arith.truncf %11 : vector<8x32xf32> to vector<8x32xbf16>
    %c0_10 = arith.constant 0 : index
    %c0_11 = arith.constant 0 : index
    %13 = vector.load %arg6[%c0_10, %c0_11] : memref<32x32xbf16, #tpu.memory_space<vmem>>, vector<32x32xbf16>
    %cst_12 = arith.constant dense<0.000000e+00> : vector<8x32xf32>
    %14 = tpu.matmul %12, %13, %cst_12 {dimension_numbers = #tpu.dot_dimension_numbers<[1], [0], [0], [1], [0, 0, 1, 1], [], []>} : vector<8x32xbf16>, vector<32x32xbf16>, vector<8x32xf32> -> vector<8x32xf32>
    %c0_13 = arith.constant 0 : index
    %c0_14 = arith.constant 0 : index
    %15 = vector.load %arg7[%c0_13, %c0_14] : memref<1x32xf32, #tpu.memory_space<vmem>>, vector<1x32xf32>
    %16 = vector.broadcast %15 : vector<1x32xf32> to vector<8x32xf32>
    %17 = arith.addf %14, %16 : vector<8x32xf32>
    %cst_15 = arith.constant 0.000000e+00 : f32
    %18 = vector.broadcast %cst_15 : f32 to vector<8x32xf32>
    %19 = arith.maximumf %17, %18 : vector<8x32xf32>
    %20 = arith.truncf %19 : vector<8x32xf32> to vector<8x32xbf16>
    %c0_16 = arith.constant 0 : index
    %c0_17 = arith.constant 0 : index
    %21 = vector.load %arg8[%c0_16, %c0_17] : memref<32x256xbf16, #tpu.memory_space<vmem>>, vector<32x256xbf16>
    %cst_18 = arith.constant dense<0.000000e+00> : vector<8x256xf32>
    %22 = tpu.matmul %20, %21, %cst_18 {dimension_numbers = #tpu.dot_dimension_numbers<[1], [0], [0], [1], [0, 0, 1, 1], [], []>} : vector<8x32xbf16>, vector<32x256xbf16>, vector<8x256xf32> -> vector<8x256xf32>
    %c0_19 = arith.constant 0 : index
    %c0_20 = arith.constant 0 : index
    %23 = vector.load %arg9[%c0_19, %c0_20] : memref<1x256xf32, #tpu.memory_space<vmem>>, vector<1x256xf32>
    %24 = vector.broadcast %23 : vector<1x256xf32> to vector<8x256xf32>
    %25 = arith.addf %22, %24 : vector<8x256xf32>
    %26 = vector.extract_strided_slice %25 {offsets = [0, 0], sizes = [8, 128], strides = [1, 1]} : vector<8x256xf32> to vector<8x128xf32>
    %27 = vector.extract_strided_slice %25 {offsets = [0, 128], sizes = [8, 128], strides = [1, 1]} : vector<8x256xf32> to vector<8x128xf32>
    %cst_21 = arith.constant -4.000000e+00 : f32
    %cst_22 = arith.constant 1.500000e+01 : f32
    %28 = vector.broadcast %cst_21 : f32 to vector<8x128xf32>
    %29 = arith.maximumf %28, %27 : vector<8x128xf32>
    %30 = vector.broadcast %cst_22 : f32 to vector<8x128xf32>
    %31 = arith.minimumf %30, %29 : vector<8x128xf32>
    %32 = math.exp %31 : vector<8x128xf32>
    %33 = arith.mulf %32, %4 : vector<8x128xf32>
    %34 = arith.addf %26, %33 : vector<8x128xf32>
    %c0_23 = arith.constant 0 : index
    %c0_24 = arith.constant 0 : index
    %35 = vector.load %arg10[%c0_23, %c0_24] : memref<16x32xbf16, #tpu.memory_space<vmem>>, vector<16x32xbf16>
    %cst_25 = arith.constant dense<0.000000e+00> : vector<8x32xf32>
    %36 = tpu.matmul %3, %35, %cst_25 {dimension_numbers = #tpu.dot_dimension_numbers<[1], [0], [0], [1], [0, 0, 1, 1], [], []>} : vector<8x16xbf16>, vector<16x32xbf16>, vector<8x32xf32> -> vector<8x32xf32>
    %37 = arith.truncf %34 : vector<8x128xf32> to vector<8x128xbf16>
    %c0_26 = arith.constant 0 : index
    %c0_27 = arith.constant 0 : index
    %38 = vector.load %arg11[%c0_26, %c0_27] : memref<128x32xbf16, #tpu.memory_space<vmem>>, vector<128x32xbf16>
    %cst_28 = arith.constant dense<0.000000e+00> : vector<8x32xf32>
    %39 = tpu.matmul %37, %38, %cst_28 {dimension_numbers = #tpu.dot_dimension_numbers<[1], [0], [0], [1], [0, 0, 1, 1], [], []>} : vector<8x128xbf16>, vector<128x32xbf16>, vector<8x32xf32> -> vector<8x32xf32>
    %40 = arith.addf %36, %39 : vector<8x32xf32>
    %c0_29 = arith.constant 0 : index
    %c0_30 = arith.constant 0 : index
    %41 = vector.load %arg12[%c0_29, %c0_30] : memref<1x32xf32, #tpu.memory_space<vmem>>, vector<1x32xf32>
    %42 = vector.broadcast %41 : vector<1x32xf32> to vector<8x32xf32>
    %43 = arith.addf %40, %42 : vector<8x32xf32>
    %cst_31 = arith.constant 0.000000e+00 : f32
    %44 = vector.broadcast %cst_31 : f32 to vector<8x32xf32>
    %45 = arith.maximumf %43, %44 : vector<8x32xf32>
    %46 = arith.truncf %45 : vector<8x32xf32> to vector<8x32xbf16>
    %c0_32 = arith.constant 0 : index
    %c0_33 = arith.constant 0 : index
    %47 = vector.load %arg13[%c0_32, %c0_33] : memref<32x32xbf16, #tpu.memory_space<vmem>>, vector<32x32xbf16>
    %cst_34 = arith.constant dense<0.000000e+00> : vector<8x32xf32>
    %48 = tpu.matmul %46, %47, %cst_34 {dimension_numbers = #tpu.dot_dimension_numbers<[1], [0], [0], [1], [0, 0, 1, 1], [], []>} : vector<8x32xbf16>, vector<32x32xbf16>, vector<8x32xf32> -> vector<8x32xf32>
    %c0_35 = arith.constant 0 : index
    %c0_36 = arith.constant 0 : index
    %49 = vector.load %arg14[%c0_35, %c0_36] : memref<1x32xf32, #tpu.memory_space<vmem>>, vector<1x32xf32>
    %50 = vector.broadcast %49 : vector<1x32xf32> to vector<8x32xf32>
    %51 = arith.addf %48, %50 : vector<8x32xf32>
    %cst_37 = arith.constant 0.000000e+00 : f32
    %52 = vector.broadcast %cst_37 : f32 to vector<8x32xf32>
    %53 = arith.maximumf %51, %52 : vector<8x32xf32>
    %54 = arith.truncf %53 : vector<8x32xf32> to vector<8x32xbf16>
    %c0_38 = arith.constant 0 : index
    %c0_39 = arith.constant 0 : index
    %55 = vector.load %arg15[%c0_38, %c0_39] : memref<32x128xbf16, #tpu.memory_space<vmem>>, vector<32x128xbf16>
    %cst_40 = arith.constant dense<0.000000e+00> : vector<8x128xf32>
    %56 = tpu.matmul %54, %55, %cst_40 {dimension_numbers = #tpu.dot_dimension_numbers<[1], [0], [0], [1], [0, 0, 1, 1], [], []>} : vector<8x32xbf16>, vector<32x128xbf16>, vector<8x128xf32> -> vector<8x128xf32>
    %c0_41 = arith.constant 0 : index
    %c0_42 = arith.constant 0 : index
    %57 = vector.load %arg16[%c0_41, %c0_42] : memref<1x128xf32, #tpu.memory_space<vmem>>, vector<1x128xf32>
    %58 = vector.broadcast %57 : vector<1x128xf32> to vector<8x128xf32>
    %59 = arith.addf %56, %58 : vector<8x128xf32>
    %60 = math.tanh %59 : vector<8x128xf32>
    %cst_43 = arith.constant 1.000000e+00 : f32
    %61 = vector.broadcast %cst_43 : f32 to vector<8x128xf32>
    %62 = arith.mulf %61, %60 : vector<8x128xf32>
    %c0_44 = arith.constant 0 : index
    %c0_45 = arith.constant 0 : index
    %63 = vector.load %arg17[%c0_44, %c0_45] : memref<8x384xf32, #tpu.memory_space<vmem>>, vector<8x128xf32>
    tpu.vector_store %arg17[%c0_44, %c0_45], %26 {strides = array<i32>} : memref<8x384xf32, #tpu.memory_space<vmem>>, vector<8x128xf32>,
    %c0_46 = arith.constant 0 : index
    %c128 = arith.constant 128 : index
    %64 = vector.load %arg17[%c0_46, %c128] : memref<8x384xf32, #tpu.memory_space<vmem>>, vector<8x128xf32>
    tpu.vector_store %arg17[%c0_46, %c128], %32 {strides = array<i32>} : memref<8x384xf32, #tpu.memory_space<vmem>>, vector<8x128xf32>,
    %c0_47 = arith.constant 0 : index
    %c256 = arith.constant 256 : index
    %65 = vector.load %arg17[%c0_47, %c256] : memref<8x384xf32, #tpu.memory_space<vmem>>, vector<8x128xf32>
    tpu.vector_store %arg17[%c0_47, %c256], %62 {strides = array<i32>} : memref<8x384xf32, #tpu.memory_space<vmem>>, vector<8x128xf32>,
    return
  }
  func.func @transform_0(%arg0: i32) -> (i32, i32) {
    %c0_i32 = arith.constant 0 : i32
    %c0_i32_0 = arith.constant 0 : i32
    return %arg0, %c0_i32 : i32, i32
  }
  func.func @transform_1(%arg0: i32) -> (i32, i32) {
    %c0_i32 = arith.constant 0 : i32
    %c0_i32_0 = arith.constant 0 : i32
    return %arg0, %c0_i32 : i32, i32
  }
  func.func @transform_2(%arg0: i32) -> (i32, i32) {
    %c0_i32 = arith.constant 0 : i32
    %c0_i32_0 = arith.constant 0 : i32
    return %arg0, %c0_i32 : i32, i32
  }
  func.func @transform_3(%arg0: i32) -> (i32, i32) {
    %c0_i32 = arith.constant 0 : i32
    %c0_i32_0 = arith.constant 0 : i32
    %c0_i32_1 = arith.constant 0 : i32
    return %c0_i32, %c0_i32_0 : i32, i32
  }
  func.func @transform_4(%arg0: i32) -> (i32, i32) {
    %c0_i32 = arith.constant 0 : i32
    %c0_i32_0 = arith.constant 0 : i32
    %c0_i32_1 = arith.constant 0 : i32
    return %c0_i32, %c0_i32_0 : i32, i32
  }
  func.func @transform_5(%arg0: i32) -> (i32, i32) {
    %c0_i32 = arith.constant 0 : i32
    %c0_i32_0 = arith.constant 0 : i32
    %c0_i32_1 = arith.constant 0 : i32
    return %c0_i32, %c0_i32_0 : i32, i32
  }
  func.func @transform_6(%arg0: i32) -> (i32, i32) {
    %c0_i32 = arith.constant 0 : i32
    %c0_i32_0 = arith.constant 0 : i32
    %c0_i32_1 = arith.constant 0 : i32
    return %c0_i32, %c0_i32_0 : i32, i32
  }
  func.func @transform_7(%arg0: i32) -> (i32, i32) {
    %c0_i32 = arith.constant 0 : i32
    %c0_i32_0 = arith.constant 0 : i32
    %c0_i32_1 = arith.constant 0 : i32
    return %c0_i32, %c0_i32_0 : i32, i32
  }
  func.func @transform_8(%arg0: i32) -> (i32, i32) {
    %c0_i32 = arith.constant 0 : i32
    %c0_i32_0 = arith.constant 0 : i32
    %c0_i32_1 = arith.constant 0 : i32
    return %c0_i32, %c0_i32_0 : i32, i32
  }
  func.func @transform_9(%arg0: i32) -> (i32, i32) {
    %c0_i32 = arith.constant 0 : i32
    %c0_i32_0 = arith.constant 0 : i32
    %c0_i32_1 = arith.constant 0 : i32
    return %c0_i32, %c0_i32_0 : i32, i32
  }
  func.func @transform_10(%arg0: i32) -> (i32, i32) {
    %c0_i32 = arith.constant 0 : i32
    %c0_i32_0 = arith.constant 0 : i32
    %c0_i32_1 = arith.constant 0 : i32
    return %c0_i32, %c0_i32_0 : i32, i32
  }
  func.func @transform_11(%arg0: i32) -> (i32, i32) {
    %c0_i32 = arith.constant 0 : i32
    %c0_i32_0 = arith.constant 0 : i32
    %c0_i32_1 = arith.constant 0 : i32
    return %c0_i32, %c0_i32_0 : i32, i32
  }
  func.func @transform_12(%arg0: i32) -> (i32, i32) {
    %c0_i32 = arith.constant 0 : i32
    %c0_i32_0 = arith.constant 0 : i32
    %c0_i32_1 = arith.constant 0 : i32
    return %c0_i32, %c0_i32_0 : i32, i32
  }
  func.func @transform_13(%arg0: i32) -> (i32, i32) {
    %c0_i32 = arith.constant 0 : i32
    %c0_i32_0 = arith.constant 0 : i32
    %c0_i32_1 = arith.constant 0 : i32
    return %c0_i32, %c0_i32_0 : i32, i32
  }
  func.func @transform_14(%arg0: i32) -> (i32, i32) {
    %c0_i32 = arith.constant 0 : i32
    %c0_i32_0 = arith.constant 0 : i32
    %c0_i32_1 = arith.constant 0 : i32
    return %c0_i32, %c0_i32_0 : i32, i32
  }
  func.func @transform_15(%arg0: i32) -> (i32, i32) {
    %c0_i32 = arith.constant 0 : i32
    %c0_i32_0 = arith.constant 0 : i32
    %c0_i32_1 = arith.constant 0 : i32
    return %c0_i32, %c0_i32_0 : i32, i32
  }
  func.func @transform_16(%arg0: i32) -> (i32, i32) {
    %c0_i32 = arith.constant 0 : i32
    %c0_i32_0 = arith.constant 0 : i32
    return %arg0, %c0_i32 : i32, i32
  }
}

</mosaic_0001>

<bundles_post_ra>
// kernel: tpu_custom_call.1
= control target key start
LH: loop header
LB: loop body
LE: loop exit
PB: predicated region body
PF: predicated region fallthrough
CT: control target
= control target key end

     0   :  { %s1193_s0 = inlined_call_operand.hbm [shape: f32[8,20], index: 0, kind: input, shape index: {}]   ;;  %s1194_s1 = inlined_call_operand.hbm [shape: f32[8,16], index: 1, kind: input, shape index: {}]   ;;  %s1195_s2 = inlined_call_operand.hbm [shape: f32[8,128], index: 2, kind: input, shape index: {}]   ;;  %s1196_s3 = inlined_call_operand.hbm [shape: bf16[20,32], index: 3, kind: input, shape index: {}]   ;;  %s1197_s4 = inlined_call_operand.vmem [shape: f32[1,32], index: 4, kind: input, shape index: {}]   ;;  %s1198_s5 = inlined_call_operand.vmem [shape: bf16[32,32], index: 5, kind: input, shape index: {}]   ;;  %s1199_s6 = inlined_call_operand.vmem [shape: f32[1,32], index: 6, kind: input, shape index: {}]   ;;  %s1200_s7 = inlined_call_operand.vmem [shape: bf16[32,256], index: 7, kind: input, shape index: {}]   ;;  %s1201_s8 = inlined_call_operand.vmem [shape: f32[1,256], index: 8, kind: input, shape index: {}]   ;;  %s1202_s9 = inlined_call_operand.vmem [shape: bf16[16,32], index: 9, kind: input, shape index: {}]   ;;  %s1203_s10 = inlined_call_operand.vmem [shape: bf16[128,32], index: 10, kind: input, shape index: {}]   ;;  %s1204_s11 = inlined_call_operand.vmem [shape: f32[1,32], index: 11, kind: input, shape index: {}]   ;;  %s1205_s12 = inlined_call_operand.vmem [shape: bf16[32,32], index: 12, kind: input, shape index: {}]   ;;  %s1206_s13 = inlined_call_operand.vmem [shape: f32[1,32], index: 13, kind: input, shape index: {}]   ;;  %s1207_s14 = inlined_call_operand.vmem [shape: bf16[32,128], index: 14, kind: input, shape index: {}]   ;;  %s1208_s15 = inlined_call_operand.vmem [shape: f32[1,128], index: 15, kind: input, shape index: {}]   ;;  %s1209_s16 = inlined_call_operand.hbm [shape: f32[8,384], index: 16, kind: output, shape index: {}]  }
   0x1   :  { %1211 = sst [smem:[#allocation15_spill]] %s1193_s0 }
   0x2   :  { %21 = vsyncpa [#allocation3], 0 }
   0x3   :  { %22 = vsyncpa [#allocation6], 0 }
   0x4   :  { %23 = vsyncpa [#allocation9], 0 }
   0x5   :  { %24 = vsyncpa [#allocation4], 0  ;;  %s923_s21 = smov [#allocation5]   ;;  %s924_s23 = smov [#allocation2]  }
   0x6   :  { %s41_s22 = sshll.u32 %s923_s21, 4  ;;  %s31_s24 = sshll.u32 %s924_s23, 4  ;;  %s42_s22 = int_to_ptr.vmem [resolvable:$true] %s41_s22  ;;  %s32_s24 = int_to_ptr.vmem [resolvable:$true] %s31_s24 }
   0x7   :  { %s805_s27 = scalar_lea.hbm %s1194_s1, 128 }
   0x8   :  { %p806_p0 = scmp.ne.s32.totalorder %s1194_s1, %s805_s27  ;;  %p809_p1 = scmp.lt.u32.totalorder %s805_s27, %s1194_s1 }
   0xa   :  { %p811_p2 = pnand %p809_p1, %p806_p0 }
   0xc   :  { %814 = shalt.err (!%p811_p2)
}
   0xd   :  { %s815_s17 = scalar_lea.vmem %s42_s22, 128  ;;  %p820_p4 = scmp.lt.s32.totalorder %s42_s22, %s42_s22 }
   0xe   :  { %p816_p3 = scmp.ne.s32.totalorder %s42_s22, %s815_s17  ;;  %p821_p5 = scmp.lt.s32.totalorder %s815_s17, %s815_s17 }
  0x10   :  { %p822_p6 = por %p821_p5, %p820_p4 }
  0x12   :  { %p823_p7 = pnand %p822_p6, %p816_p3 }
  0x14   :  { %826 = shalt.err (!%p823_p7)
}
  0x15   :  { %44 = dma.hbm_to_vmem [thread:$0]  %s1194_s1, 128, %s42_s22, [#allocation6]  }
  0x16   :  { %s1212_s23 = sld [smem:[#allocation15_spill]] }
  0x1c   :  { %s827_s25 = scalar_lea.hbm %s1212_s23, 128 }
  0x1d   :  { %p828_p8 = scmp.ne.s32.totalorder %s1212_s23, %s827_s25  ;;  %p831_p9 = scmp.lt.u32.totalorder %s827_s25, %s1212_s23 }
  0x1f   :  { %p833_p10 = pnand %p831_p9, %p828_p8 }
  0x21   :  { %836 = shalt.err (!%p833_p10)
}
  0x22   :  { %s837_s30 = scalar_lea.vmem %s32_s24, 128  ;;  %p842_p12 = scmp.lt.s32.totalorder %s32_s24, %s32_s24 }
  0x23   :  { %p838_p11 = scmp.ne.s32.totalorder %s32_s24, %s837_s30  ;;  %p843_p13 = scmp.lt.s32.totalorder %s837_s30, %s837_s30 }
  0x25   :  { %p844_p0 = por %p843_p13, %p842_p12 }
  0x27   :  { %p845_p1 = pnand %p844_p0, %p838_p11 }
  0x29   :  { %848 = shalt.err (!%p845_p1)
}
  0x2a   :  { %34 = dma.hbm_to_vmem [thread:$0]  %s1212_s23, 128, %s32_s24, [#allocation3]  }
  0x2b   :  { %s925_s0 = smov [#allocation7]   ;;  %s926_s18 = smov [#allocation8]  }
  0x2c   :  { %s51_s17 = sshll.u32 %s925_s0, 4  ;;  %s60_s19 = sshll.u32 %s926_s18, 4  ;;  %s52_s17 = int_to_ptr.vmem [resolvable:$true] %s51_s17  ;;  %s1042_s19 = int_to_ptr.vmem [resolvable:$true] %s60_s19 }
  0x2d   :  { %s849_s25 = scalar_lea.hbm %s1195_s2, 128 }
  0x2e   :  { %p850_p2 = scmp.ne.s32.totalorder %s1195_s2, %s849_s25  ;;  %p853_p3 = scmp.lt.u32.totalorder %s849_s25, %s1195_s2 }
  0x30   :  { %p855_p4 = pnand %p853_p3, %p850_p2 }
  0x32   :  { %858 = shalt.err (!%p855_p4)
}
  0x33   :  { %s859_s24 = scalar_lea.vmem %s52_s17, 128  ;;  %p864_p6 = scmp.lt.s32.totalorder %s52_s17, %s52_s17 }
  0x34   :  { %p860_p5 = scmp.ne.s32.totalorder %s52_s17, %s859_s24  ;;  %p865_p7 = scmp.lt.s32.totalorder %s859_s24, %s859_s24 }
  0x36   :  { %p866_p8 = por %p865_p7, %p864_p6 }
  0x38   :  { %p867_p9 = pnand %p866_p8, %p860_p5 }
  0x3a   :  { %870 = shalt.err (!%p867_p9)
}
  0x3b   :  { %54 = dma.hbm_to_vmem [thread:$0]  %s1195_s2, 128, %s52_s17, [#allocation6]  }
  0x3c   :  { %s871_s0 = scalar_lea.hbm %s1196_s3, 192 }
  0x3d   :  { %p872_p10 = scmp.ne.s32.totalorder %s1196_s3, %s871_s0  ;;  %p875_p11 = scmp.lt.u32.totalorder %s871_s0, %s1196_s3 }
  0x3f   :  { %p877_p12 = pnand %p875_p11, %p872_p10 }
  0x41   :  { %880 = shalt.err (!%p877_p12)
}
  0x42   :  { %s881_s26 = scalar_lea.vmem %s1042_s19, 192  ;;  %p886_p0 = scmp.lt.s32.totalorder %s1042_s19, %s1042_s19 }
  0x43   :  { %p882_p13 = scmp.ne.s32.totalorder %s1042_s19, %s881_s26  ;;  %p887_p1 = scmp.lt.s32.totalorder %s881_s26, %s881_s26 }
  0x45   :  { %p888_p2 = por %p887_p1, %p886_p0 }
  0x47   :  { %p889_p3 = pnand %p888_p2, %p882_p13 }
  0x49   :  { %892 = shalt.err (!%p889_p3)
}
  0x4a   :  { %s927_s2 = smov 64   ;;  %s928_s17 = smov 4  }
  0x4b   :  { %66 = dma.hbm_to_vmem [thread:$0]  %s1196_s3, 192, %s1042_s19, [#allocation9], %s927_s2, %s927_s2, %s928_s17  }
  0x4c   :  { %915 = dma.done.wait [#allocation3], 128  }
  0x4d   :  { %916 = vsyncadd [#allocation3], 4294967168 }
  0x4e   :  { %917 = dma.done.wait [#allocation6], 256  }
  0x4f   :  { %918 = vsyncadd [#allocation6], 4294967040 }
  0x50   :  { %919 = dma.done.wait [#allocation9], 192  }
  0x51   :  { %920 = vsyncadd [#allocation9], 4294967104  ;;  %v929_v0 = vmov 0.0   ;;  %vm930_vm0 = vmmov 0   ;;  %v778_v1 = vld [vmem:[#allocation8] sm:$0xff]   ;;  %vm132_vm1 = vcmask 1041408   ;;  %v253_v40 = vlaneseq }
  0x52   :  { %710 = vmatprep.subr.bf16.mxu0 %v929_v0  ;;  %714 = vmatprep.mubr.msk.bf16.mxu0 %vm930_vm0, %v929_v0  ;;  %v779_v2 = vld [vmem:[#allocation8 + $0x8] ss:$0 sps:$4 sm:$0x33]   ;;  %vm128_vm2 = vcmask 162816   ;;  %v781_v7 = vld [vmem:[%s1198_s5 + $0x8] sm:$0xff]   ;;  %vm201_vm3 = vcmask 261120  }
  0x53   :  { %718 = vmatprep.subr.bf16.mxu1 %v929_v0  ;;  %722 = vmatprep.mubr.msk.bf16.mxu1 %vm930_vm0, %v929_v0  ;;  %v104_v3 = vld [vmem:[#allocation2] sm:$0xff]  ;;  %v134_v4 = vsel %vm132_vm1, %v779_v2, 0  ;;  %v787_v18 = vld [vmem:[%s1200_s7 + $0x14] ss:$8 sps:$4 sm:$0xff]   ;;  %v785_v19 = vld [vmem:[%s1200_s7 + $0x10] ss:$8 sps:$4 sm:$0xff]  }
  0x54   :  { %711 = vmatpush3.bf16.msra.mxu0 %v778_v1  ;;  %v105_v5 = vpack.c.bf16 %v104_v3, %v104_v3  ;;  %v780_v6 = vld [vmem:[%s1198_s5] sm:$0xff]   ;;  %v931_v20 = vmov 0   ;;  %v789_v30 = vld [vmem:[%s1203_s10 + $0x8] sm:$0xff]   ;;  %v790_v31 = vld [vmem:[%s1203_s10 + $0x10] sm:$0xff]   ;;  %vm446_vm4 = vcmask 130048   ;;  %v254_v41 = vshrl.u32 %v253_v40, 7 }
  0x55   :  { %712 = vmatprep.subr.bf16.mxu0 %v929_v0  ;;  %719 = vmatpush3.bf16.msra.mxu1 %v780_v6  ;;  %v782_v8 = vld [vmem:[%s1200_s7] ss:$8 sps:$4 sm:$0xff]   ;;  %v784_v9 = vld [vmem:[%s1200_s7 + $0x4] ss:$8 sps:$4 sm:$0xff]   ;;  %v791_v32 = vld [vmem:[%s1203_s10 + $0x18] sm:$0xff]  }
  0x56   :  { %720 = vmatprep.subr.bf16.mxu1 %v929_v0  ;;  %v655_v10 = vld [vmem:[%s1197_s4] ss:$0 sm:$0xff]  ;;  %v793_v34 = vld [vmem:[%s1203_s10 + $0x28] sm:$0xff]   ;;  %v795_v35 = vld [vmem:[%s1203_s10 + $0x30] sm:$0xff]   ;;  %v255_v42 = vsub.s32 0, %v254_v41  ;;  %v259_v44 = vsub.s32 1, %v254_v41 }
  0x57   :  { %v788_v21 = vld [vmem:[%s1203_s10] sm:$0xff]   ;;  %v796_v37 = vld [vmem:[%s1203_s10 + $0x38] sm:$0xff]   ;;  %v106_v38 = vld [vmem:[#allocation5] sm:$0xff] }
  0x58   :  { %713 = vmatpush3.bf16.msra.mxu0 %v134_v4  ;;  %v659_v22 = vld [vmem:[%s1199_s6] ss:$0 sm:$0xff]  ;;  %v107_v39 = vpack.c.bf16 %v106_v38, %v106_v38  ;;  %v108_v56 = vld [vmem:[#allocation7] sm:$0xff]  ;;  %v798_v3 = vld [vmem:[%s1205_s12 + $0x8] sm:$0xff]  }
  0x59   :  { %721 = vmatpush3.bf16.msra.mxu1 %v781_v7  ;;  %286 = vmatprep.subr.bf16.mxu0 %v784_v9  ;;  %v792_v33 = vld [vmem:[%s1203_s10 + $0x20] sm:$0xff]  }
  0x5a   :  { %726 = vmatprep.subr.bf16.mxu1 %v929_v0  ;;  %v794_v36 = vld [vmem:[%s1202_s9] sm:$0xff]  }
  0x5b   :  { %715 = vmatmul.mubr.msk.bf16.vlgmr.msra.gmra.mrb[0].mxu0 %vm128_vm2, %v105_v5  ;;  %v251_v43 = vld [vmem:[%s1201_s8] sm:$0x3] }
  0x5c   :  { %287 = vmatpush1.bf16.msra.mxu0 %v782_v8  ;;  %318 = vmatprep.mubr.bf16.mxu0 %v931_v20  ;;  %v256_v45 = vrot.slane %v251_v43, %v255_v42  ;;  %v260_v46 = vrot.slane %v251_v43, %v259_v44  ;;  %v797_v2 = vld [vmem:[%s1205_s12] sm:$0xff]  }
  0x5d   :  { %288 = vmatprep.subr.bf16.mxu0 %v787_v18  ;;  %v678_v5 = vld [vmem:[%s1204_s11] ss:$0 sm:$0xff] }
  0x60   :  { %289 = vmatpush1.bf16.msra.mxu0 %v785_v19 }
  0x61   :  { %746 = vmatprep.subr.bf16.mxu0 %v929_v0 }
 0x12e   :  { %v170_v11 = vpop.f32.mrb[0].mxu0 }
 0x12f   :  { %v171_v12 = vadd.f32 %v655_v10, %v170_v11  ;;  %v716_v13 = vpop.f32.mrb[1].mxu0 }
 0x130   :  { %v173_v14 = vpop.f32.mrb[2].mxu0 }
 0x131   :  { %v176_v15 = vmax.f32 %v171_v12, 0.0  ;;  %v717_v16 = vpop.f32.mrb[3].mxu0  ;;  %v799_v12 = vld [vmem:[%s1207_s14] sm:$0xff]   ;;  %v800_v14 = vld [vmem:[%s1207_s14 + $0x8] sm:$0xff]  }
 0x133   :  { %v177_v17 = vpack.c.bf16 %v176_v15, %v176_v15  ;;  %v679_v15 = vld [vmem:[%s1206_s13] ss:$0 sm:$0xff]  ;;  %s932_s13 = smov [#allocation10]  }
 0x134   :  { %s644_s14 = sshll.u32 %s932_s13, 4  ;;  %s645_s14 = int_to_ptr.vmem [resolvable:$true] %s644_s14 }
 0x135   :  { %723 = vmatmul.mubr.msk.bf16.vlgmr.msra.gmra.mrb[0].mxu1 %vm201_vm3, %v177_v17  ;;  %s893_s19 = scalar_lea.vmem %s645_s14, 384  ;;  %p898_p5 = scmp.lt.s32.totalorder %s645_s14, %s645_s14 }
 0x136   :  { %742 = vmatprep.mubr.msk.bf16.mxu1 %vm930_vm0, %v929_v0  ;;  %727 = vmatpush3.bf16.msra.mxu1 %v788_v21  ;;  %p894_p4 = scmp.ne.s32.totalorder %s645_s14, %s893_s19  ;;  %p899_p6 = scmp.lt.s32.totalorder %s893_s19, %s893_s19 }
 0x137   :  { %728 = vmatprep.subr.bf16.mxu1 %v929_v0 }
 0x138   :  { %p900_p7 = por %p899_p6, %p898_p5 }
 0x13a   :  { %729 = vmatpush3.bf16.msra.mxu1 %v789_v30  ;;  %p901_p8 = pnand %p900_p7, %p894_p4 }
 0x13b   :  { %730 = vmatprep.subr.bf16.mxu1 %v929_v0 }
 0x13e   :  { %731 = vmatpush3.bf16.msra.mxu1 %v790_v31 }
 0x13f   :  { %732 = vmatprep.subr.bf16.mxu1 %v929_v0 }
 0x142   :  { %733 = vmatpush3.bf16.msra.mxu1 %v791_v32 }
 0x143   :  { %734 = vmatprep.subr.bf16.mxu1 %v929_v0 }
 0x146   :  { %735 = vmatpush3.bf16.msra.mxu1 %v792_v33 }
 0x147   :  { %736 = vmatprep.subr.bf16.mxu1 %v929_v0 }
 0x14a   :  { %737 = vmatpush3.bf16.msra.mxu1 %v793_v34 }
 0x14b   :  { %738 = vmatprep.subr.bf16.mxu1 %v929_v0 }
 0x14e   :  { %739 = vmatpush3.bf16.msra.mxu1 %v795_v35 }
 0x14f   :  { %740 = vmatprep.subr.bf16.mxu1 %v929_v0 }
 0x152   :  { %741 = vmatpush3.bf16.msra.mxu1 %v796_v37 }
 0x208   :  { %v239_v23 = vpop.f32.mrb[0].mxu1 }
 0x209   :  { %v240_v24 = vadd.f32 %v659_v22, %v239_v23  ;;  %v724_v25 = vpop.f32.mrb[1].mxu1 }
 0x20a   :  { %v242_v26 = vpop.f32.mrb[2].mxu1 }
 0x20b   :  { %v245_v27 = vmax.f32 %v240_v24, 0.0  ;;  %v725_v28 = vpop.f32.mrb[3].mxu1 }
 0x20d   :  { %v246_v29 = vpack.c.bf16 %v245_v27, %v245_v27 }
 0x20f   :  { %667 = vmatmul.mubr.msk.bf16.vlgmr.msra.gmra.mrb[4].mxu0 %vm201_vm3, %v246_v29 }
 0x210   :  { %748 = vmatprep.mubr.msk.bf16.mxu0 %vm930_vm0, %v929_v0  ;;  %747 = vmatpush3.bf16.msra.mxu0 %v794_v36 }
 0x211   :  { %752 = vmatprep.subr.bf16.mxu0 %v929_v0 }
 0x217   :  { %749 = vmatmul.mubr.msk.bf16.vlgmr.msra.gmra.mrb[8].mxu0 %vm446_vm4, %v107_v39 }
 0x218   :  { %756 = vmatprep.mubr.msk.bf16.mxu0 %vm930_vm0, %v929_v0  ;;  %753 = vmatpush3.bf16.msra.mxu0 %v797_v2 }
 0x219   :  { %754 = vmatprep.subr.bf16.mxu0 %v929_v0 }
 0x21c   :  { %755 = vmatpush3.bf16.msra.mxu0 %v798_v3 }
 0x21d   :  { %760 = vmatprep.subr.bf16.mxu0 %v929_v0 }
 0x2e2   :  { %v320_v47 = vpop.f32.mrb[4].mxu0 }
 0x2e3   :  { %v321_v48 = vadd.f32 %v320_v47, %v256_v45  ;;  %v322_v49 = vpop.f32.mrb[5].mxu0 }
 0x2e4   :  { %v323_v50 = vadd.f32 %v322_v49, %v260_v46  ;;  %v324_v51 = vpop.f32.mrb[6].mxu0 }
 0x2e5   :  { %635 = vst [vmem:[#allocation10] sm:$0xff] %v321_v48  ;;  %v325_v52 = vpop.f32.mrb[7].mxu0 }
 0x2e6   :  { %v327_v53 = vmax.f32 %v323_v50, -4.0 }
 0x2e8   :  { %v328_v54 = vmin.f32 %v327_v53, 15.0 }
 0x2ea   :  { %v329_v55 = vmul.f32 1.442695, %v328_v54  ;;  %v484_v61 = vpop.f32.mrb[8].mxu0 }
 0x2eb   :  { %v750_v62 = vpop.f32.mrb[9].mxu0 }
 0x2ec   :  { %801 = vpow2.f32 %v329_v55  ;;  %v487_v63 = vpop.f32.mrb[10].mxu0 }
 0x2ed   :  { %v751_v1 = vpop.f32.mrb[11].mxu0 }
 0x2f6   :  { %v802_v57 = vpop.eup %801 }
 0x2f7   :  { %636 = vst [vmem:[#allocation10 + $0x8] sm:$0xff] %v802_v57  ;;  %v331_v58 = vmul.f32 %v802_v57, %v108_v56 }
 0x2f9   :  { %v332_v59 = vadd.f32 %v331_v58, %v321_v48 }
 0x2fb   :  { %v335_v60 = vpack.c.bf16 %v332_v59, %v332_v59 }
 0x2fd   :  { %743 = vmatmul.mubr.bf16.vlgmr.msra.gmra.mrb[4].mxu1 %v335_v60 }
 0x3d0   :  { %v434_v4 = vpop.f32.mrb[4].mxu1 }
 0x3d1   :  { %v485_v6 = vadd.f32 %v484_v61, %v434_v4  ;;  %v744_v7 = vpop.f32.mrb[5].mxu1 }
 0x3d2   :  { %v437_v8 = vpop.f32.mrb[6].mxu1 }
 0x3d3   :  { %v497_v9 = vadd.f32 %v678_v5, %v485_v6  ;;  %v745_v10 = vpop.f32.mrb[7].mxu1 }
 0x3d5   :  { %v498_v11 = vmax.f32 %v497_v9, 0.0 }
 0x3d7   :  { %v499_v13 = vpack.c.bf16 %v498_v11, %v498_v11 }
 0x3d9   :  { %757 = vmatmul.mubr.msk.bf16.vlgmr.msra.gmra.mrb[12].mxu0 %vm201_vm3, %v499_v13 }
 0x3da   :  { %761 = vmatpush3.bf16.msra.mxu0 %v799_v12  ;;  %764 = vmatprep.mubr.msk.bf16.mxu0 %vm930_vm0, %v929_v0 }
 0x3db   :  { %762 = vmatprep.subr.bf16.mxu0 %v929_v0  ;;  %v683_v0 = vld [vmem:[%s1208_s15] ss:$0 sm:$0xff] }
 0x3de   :  { %763 = vmatpush3.bf16.msra.mxu0 %v800_v14 }
 0x4ac   :  { %v560_v16 = vpop.f32.mrb[12].mxu0 }
 0x4ad   :  { %v561_v17 = vadd.f32 %v679_v15, %v560_v16  ;;  %v758_v18 = vpop.f32.mrb[13].mxu0 }
 0x4ae   :  { %v563_v19 = vpop.f32.mrb[14].mxu0 }
 0x4af   :  { %v566_v20 = vmax.f32 %v561_v17, 0.0  ;;  %v759_v21 = vpop.f32.mrb[15].mxu0 }
 0x4b1   :  { %v567_v22 = vpack.c.bf16 %v566_v20, %v566_v20 }
 0x4b3   :  { %765 = vmatmul.mubr.msk.bf16.vlgmr.msra.gmra.mrb[16].mxu0 %vm201_vm3, %v567_v22 }
 0x586   :  { %v628_v23 = vpop.f32.mrb[16].mxu0 }
 0x587   :  { %v629_v24 = vadd.f32 %v683_v0, %v628_v23  ;;  %v766_v25 = vpop.f32.mrb[17].mxu0 }
 0x588   :  { %v631_v26 = vpop.f32.mrb[18].mxu0 }
 0x589   :  { %803 = vtanh.f32 %v629_v24  ;;  %v767_v27 = vpop.f32.mrb[19].mxu0 }
 0x593   :  { %v804_v28 = vpop.eup %803 }
 0x594   :  { %637 = vst [vmem:[#allocation10 + $0x10] sm:$0xff] %v804_v28 }
 0x595   :  { %904 = shalt.err (!%p901_p8)
}
 0x596   :  { %s905_s24 = scalar_lea.hbm %s1209_s16, 384 }
 0x597   :  { %p906_p9 = scmp.ne.s32.totalorder %s1209_s16, %s905_s24  ;;  %p909_p10 = scmp.lt.u32.totalorder %s905_s24, %s1209_s16 }
 0x599   :  { %p911_p11 = pnand %p909_p10, %p906_p9 }
 0x59b   :  { %914 = shalt.err (!%p911_p11)
}
 0x59c   :  { %647 = dma.vmem_to_hbm [thread:$0]  %s645_s14, 384, %s1209_s16, [#allocation4]  }
 0x59d   :  { %921 = dma.done.wait [#allocation4], 384  }
 0x59e   :  { %922 = vsyncadd [#allocation4], 4294966912 }
 0x59f   :  { %651 = vsyncpa [#allocation3], 1 }
 0x5a0   :  { %652 = vsyncpa [#allocation6], 1 }
 0x5a1   :  { %653 = vsyncpa [#allocation9], 1 }
 0x5a2   :  { %654 = vsyncpa [#allocation4], 1 }

</bundles_post_ra>
